<compile_context>
chip_gen: v5e
topology: v5e:2x2
jax: 0.10.0
libtpu: 0.0.40
codegen_flags: <defaults>
</compile_context>

<pallas_src>
import functools

import jax
import jax.numpy as jnp
from jax.experimental import pallas as pl
from jax.experimental.pallas import tpu as pltpu

NUM_HEADS = 4
LN_EPS = 1e-5
NUM_VECS = 8  # bqkv, bo, g1, be1, b1, b2, g2, be2


def _layernorm(x, gamma, beta):
    mean = jnp.mean(x, axis=-1, keepdims=True)
    var = jnp.mean((x - mean) ** 2, axis=-1, keepdims=True)
    inv = jax.lax.rsqrt(var + LN_EPS)
    return (x - mean) * inv * gamma + beta


# --------------------------- fused stack kernel ---------------------------
def _stack_kernel(x_ref, wqkv_ref, wo_ref, w1_ref, w2_ref, vec_ref, out_ref,
                  *, resident_weights, matmul_dtype, num_heads):
    layer = pl.program_id(1)

    BB, S, D = x_ref.shape            # block: (batch_block, seq, embed)
    R = BB * S                        # flattened rows fed to the MXU
    dh = D // num_heads

    if resident_weights:
        # Whole (L, ...) stacks are VMEM-resident; pick this layer's slab.
        wqkv = wqkv_ref[layer]        # (D, 3D)
        wo = wo_ref[layer]            # (D, D)
        w1 = w1_ref[layer]            # (D, F)
        w2 = w2_ref[layer]            # (F, D)
        vecs = vec_ref[layer]         # (NUM_VECS, P)
    else:
        # Per-layer streamed blocks (leading dim 1, double-buffered by Pallas).
        wqkv = wqkv_ref[0]
        wo = wo_ref[0]
        w1 = w1_ref[0]
        w2 = w2_ref[0]
        vecs = vec_ref[0]
    F = w1.shape[1]

    def mm(a, b):  # activation (f32) x weight (weight dtype) -> f32 acc
        return jnp.dot(a.astype(matmul_dtype), b,
                       preferred_element_type=jnp.float32)

    def bmm(eq, a, b):  # batched activation x activation -> f32 acc
        return jnp.einsum(eq, a.astype(matmul_dtype), b.astype(matmul_dtype),
                          preferred_element_type=jnp.float32)

    # First layer for this batch block: seed the carried output block from x.
    # out_ref's block index is constant across the layer axis, so it stays
    # resident in VMEM and acts as the layer-to-layer activation carry.
    @pl.when(layer == 0)
    def _():
        out_ref[...] = x_ref[...]

    x = out_ref[...].reshape(R, D)    # (R, D) f32

    # ---- fused QKV projection: one (R, D) @ (D, 3D) MXU dot ---------------
    qkv = mm(x, wqkv) + vecs[0:1, :3 * D]
    scale = 1.0 / jnp.sqrt(jnp.float32(dh))
    q = (qkv[:, 0:D] * scale).reshape(BB, S, D)   # fold 1/sqrt(dh) into q once
    k = qkv[:, D:2 * D].reshape(BB, S, D)
    v = qkv[:, 2 * D:3 * D].reshape(BB, S, D)

    # ---- multi-head self-attention (batched over the batch dim) -----------
    heads = []
    for h in range(num_heads):                    # static unroll over heads
        sl = slice(h * dh, (h + 1) * dh)
        scores = bmm("bqd,bkd->bqk", q[:, :, sl], k[:, :, sl])
        scores = scores - jnp.max(scores, axis=-1, keepdims=True)
        p = jnp.exp(scores)
        p = p / jnp.sum(p, axis=-1, keepdims=True)
        a = bmm("bqk,bkd->bqd", p, v[:, :, sl])
        heads.append(a.reshape(R, dh))
    # Single K=D output projection on the concatenated head outputs
    # (replaces H per-head K=dh dots + VALU accumulation).
    attn = mm(jnp.concatenate(heads, axis=-1), wo) + vecs[1:2, :D]

    # ---- add & norm 1 ------------------------------------------------------
    h1 = _layernorm(x + attn, vecs[2:3, :D], vecs[3:4, :D])

    # ---- FFN (Linear -> ReLU -> Linear) ------------------------------------
    f = mm(h1, w1) + vecs[4:5, :F]
    f = jnp.maximum(f, 0.0)
    f = mm(f, w2) + vecs[5:6, :D]

    # ---- add & norm 2 ------------------------------------------------------
    h2 = _layernorm(h1 + f, vecs[6:7, :D], vecs[7:8, :D])

    # Carry to the next layer; HBM writeback happens when the batch block
    # index changes / at grid end (out block index is constant across layers).
    out_ref[...] = h2.reshape(BB, S, D)


# --------------------------- host-side packing ---------------------------
def _round_up(n, m):
    return ((n + m - 1) // m) * m


def pack_params(layer_params_list, weight_dtype=jnp.float32):
    """Fuse QKV, stack per-layer weights along a leading layer axis and pack
    all small bias/LayerNorm vectors of a layer into one lane-padded array."""
    D = layer_params_list[0]["wq"].shape[0]
    F = layer_params_list[0]["w1"].shape[1]
    P = _round_up(max(3 * D, F), 128)  # lane-dense small-vector rows

    def row(vec):
        return jnp.pad(vec, (0, P - vec.shape[0]))

    wqkv, wo, w1, w2, vecs = [], [], [], [], []
    for p in layer_params_list:
        wqkv.append(jnp.concatenate([p["wq"], p["wk"], p["wv"]], axis=1))
        wo.append(p["wo"])
        w1.append(p["w1"])
        w2.append(p["w2"])
        vecs.append(jnp.stack([
            row(jnp.concatenate([p["bq"], p["bk"], p["bv"]])),   # 0: fused qkv bias
            row(p["bo"]),                                        # 1
            row(p["g1"]),                                        # 2
            row(p["be1"]),                                       # 3
            row(p["b1"]),                                        # 4
            row(p["b2"]),                                        # 5
            row(p["g2"]),                                        # 6
            row(p["be2"]),                                       # 7
        ]))
    return {
        "wqkv": jnp.stack(wqkv).astype(weight_dtype),   # (L, D, 3D)
        "wo": jnp.stack(wo).astype(weight_dtype),       # (L, D, D)
        "w1": jnp.stack(w1).astype(weight_dtype),       # (L, D, F)
        "w2": jnp.stack(w2).astype(weight_dtype),       # (L, F, D)
        "vecs": jnp.stack(vecs),                        # (L, NUM_VECS, P) f32
    }


# --------------------------- wrapper ---------------------------
def transformer_layer_sequence(x, layer_params_list, *,
                               weight_dtype=jnp.float32,
                               batch_block=None,
                               weights_resident=None):
    """TransformerLayerSequence.forward: apply the stacked layers in order.

    x: (B, S, D) float32, batch-first.
    weight_dtype: jnp.float32 (strict) or jnp.bfloat16 (fast MXU path,
      matmul operands cast to bf16, f32 accumulation & vector math).
    """
    B, S, D = x.shape
    packed = pack_params(layer_params_list, weight_dtype=weight_dtype)
    L = packed["wqkv"].shape[0]
    F = packed["w1"].shape[2]

    # ---- per-generation VMEM budget ----------------------------------------
    try:
        vmem_cap = int(pltpu.get_tpu_info().vmem_capacity_bytes)
    except Exception:
        vmem_cap = 64 << 20                      # conservative (v7x per-TC)
    vmem_limit = min(int(vmem_cap * 0.75), 100 << 20)   # ~48 MiB v7x, ~96 MiB v5e/v6e
    budget = int(vmem_limit * 0.8)               # headroom for compiler temporaries

    weight_bytes = sum(int(packed[k].size) * packed[k].dtype.itemsize
                       for k in ("wqkv", "wo", "w1", "w2", "vecs"))
    per_layer_weight_bytes = weight_bytes // L

    if weights_resident is None:
        # Resident weights remove all steady-state weight DMA (otherwise the
        # stack is re-streamed once per batch block).  Budget 2x for the
        # pipeline's buffering.
        weights_resident = (2 * weight_bytes) <= (budget // 2)

    w_cost = 2 * weight_bytes if weights_resident else 2 * per_layer_weight_bytes

    # ---- batch_block: grow until the VMEM budget is hit --------------------
    if batch_block is None:
        def act_cost(bb):
            R = bb * S
            return 4 * (4 * R * D        # double-buffered x block + carried out block
                        + R * 3 * D      # fused QKV intermediate
                        + R * F          # FFN intermediate
                        + bb * S * S     # one head's score matrix
                        + 2 * R * D)     # attention / residual temporaries

        batch_block = 1
        for bb in range(1, B + 1):
            if B % bb == 0 and w_cost + act_cost(bb) <= budget:
                batch_block = bb
        # v7x has two TensorCores: when weights are resident, splitting the
        # parallel batch axis costs no extra weight traffic, so keep nb >= 2.
        if weights_resident and batch_block == B and B >= 2:
            for bb in range(B // 2, 0, -1):
                if B % bb == 0:
                    batch_block = bb
                    break
    assert B % batch_block == 0
    nb = B // batch_block

    # ---- BlockSpecs ---------------------------------------------------------
    if weights_resident:
        def w_spec(arr):
            return pl.BlockSpec(arr.shape, lambda b, l: (0,) * arr.ndim)
    else:
        def w_spec(arr):
            return pl.BlockSpec((1,) + arr.shape[1:],
                                lambda b, l: (l,) + (0,) * (arr.ndim - 1))

    kernel = functools.partial(_stack_kernel,
                               resident_weights=weights_resident,
                               matmul_dtype=weight_dtype,
                               num_heads=NUM_HEADS)

    call = pl.pallas_call(
        kernel,
        out_shape=jax.ShapeDtypeStruct((B, S, D), jnp.float32),
        grid_spec=pltpu.PrefetchScalarGridSpec(
            num_scalar_prefetch=0,
            grid=(nb, L),                          # layer (carry) axis last
            in_specs=[
                pl.BlockSpec((batch_block, S, D), lambda b, l: (b, 0, 0)),
                w_spec(packed["wqkv"]),
                w_spec(packed["wo"]),
                w_spec(packed["w1"]),
                w_spec(packed["w2"]),
                w_spec(packed["vecs"]),
            ],
            out_specs=pl.BlockSpec((batch_block, S, D), lambda b, l: (b, 0, 0)),
        ),
        compiler_params=pltpu.CompilerParams(
            dimension_semantics=("parallel", "arbitrary"),
            vmem_limit_bytes=vmem_limit,
        ),
    )
    return call(x, packed["wqkv"], packed["wo"], packed["w1"],
                packed["w2"], packed["vecs"])


# --------------------------- pure-JAX reference ---------------------------
def _layer_ref(x, p):
    B, S, D = x.shape
    dh = D // NUM_HEADS
    q = x @ p["wq"] + p["bq"]
    k = x @ p["wk"] + p["bk"]
    v = x @ p["wv"] + p["bv"]
    qh = q.reshape(B, S, NUM_HEADS, dh).transpose(0, 2, 1, 3)
    kh = k.reshape(B, S, NUM_HEADS, dh).transpose(0, 2, 1, 3)
    vh = v.reshape(B, S, NUM_HEADS, dh).transpose(0, 2, 1, 3)
    s = jnp.einsum("bhqd,bhkd->bhqk", qh, kh) / jnp.sqrt(jnp.float32(dh))
    p_attn = jax.nn.softmax(s, axis=-1)
    a = jnp.einsum("bhqk,bhkd->bhqd", p_attn, vh)
    a = a.transpose(0, 2, 1, 3).reshape(B, S, D)
    a = a @ p["wo"] + p["bo"]
    h1 = _layernorm(x + a, p["g1"], p["be1"])
    f = jnp.maximum(h1 @ p["w1"] + p["b1"], 0.0)
    f = f @ p["w2"] + p["b2"]
    return _layernorm(h1 + f, p["g2"], p["be2"])


def _sequence_ref(x, layer_params_list):
    for p in layer_params_list:
        x = _layer_ref(x, p)
    return x


# --------------------------- param construction ---------------------------
def make_layer_params(key, embed_dim, ffn_dim):
    D, F = embed_dim, ffn_dim
    ks = jax.random.split(key, 16)

    def xavier(k, shape):
        fan_in, fan_out = shape
        bound = jnp.sqrt(6.0 / (fan_in + fan_out))
        return jax.random.uniform(k, shape, jnp.float32, -bound, bound)

    def small(k, n):
        return 0.02 * jax.random.normal(k, (n,), jnp.float32)

    return {
        "wq": xavier(ks[0], (D, D)), "bq": small(ks[6], D),
        "wk": xavier(ks[1], (D, D)), "bk": small(ks[7], D),
        "wv": xavier(ks[2], (D, D)), "bv": small(ks[8], D),
        "wo": xavier(ks[3], (D, D)), "bo": small(ks[9], D),
        "g1": 1.0 + small(ks[10], D), "be1": small(ks[11], D),
        "w1": xavier(ks[4], (D, F)), "b1": small(ks[12], F),
        "w2": xavier(ks[5], (F, D)), "b2": small(ks[13], D),
        "g2": 1.0 + small(ks[14], D), "be2": small(ks[15], D),
    }


if __name__ == "__main__":
    # Small shapes consistent with a transformer layer sequence.
    BATCH, SEQ, EMBED, FFN, NUM_LAYERS = 2, 8, 32, 64, 2

    root = jax.random.PRNGKey(0)
    kx, *layer_keys = jax.random.split(root, 1 + NUM_LAYERS)

    x = jax.random.normal(kx, (BATCH, SEQ, EMBED), jnp.float32)
    layers = [make_layer_params(k, EMBED, FFN) for k in layer_keys]

    ref = _sequence_ref(x, layers)

    # 1) strict f32 path (auto config: weights resident at this size).
    out = jax.block_until_ready(transformer_layer_sequence(x, layers))
    assert out.shape == (BATCH, SEQ, EMBED)
    assert jnp.allclose(out, ref, atol=1e-4, rtol=1e-4), "f32 resident mismatch"

    # 2) streamed-weight fallback (what large stacks use), still strict f32.
    out_s = jax.block_until_ready(
        transformer_layer_sequence(x, layers, weights_resident=False))
    assert jnp.allclose(out_s, ref, atol=1e-4, rtol=1e-4), "f32 streamed mismatch"

    # 3) bf16-weight / bf16-matmul-operand path (production default for the
    #    v5e/v6e/v7x MXU); bf16 rounding => looser tolerance vs f32 reference.
    out_b = jax.block_until_ready(
        transformer_layer_sequence(x, layers, weight_dtype=jnp.bfloat16))
    assert jnp.allclose(out_b, ref, atol=5e-2, rtol=5e-2), "bf16 path mismatch"

    print("KERNEL_OK")
</pallas_src>

<mosaic_0001>
module attributes {stable_mosaic.version = 11 : i64} {
  func.func @_stack_kernel(%arg0: i32, %arg1: i32, %arg2: memref<1x8x32xf32, #tpu.memory_space<vmem>>, %arg3: memref<2x32x96xf32, #tpu.memory_space<vmem>>, %arg4: memref<2x32x32xf32, #tpu.memory_space<vmem>>, %arg5: memref<2x32x64xf32, #tpu.memory_space<vmem>>, %arg6: memref<2x64x32xf32, #tpu.memory_space<vmem>>, %arg7: memref<2x8x128xf32, #tpu.memory_space<vmem>>, %arg8: memref<1x8x32xf32, #tpu.memory_space<vmem>>) attributes {dimension_semantics = [#tpu.dimension_semantics<parallel>, #tpu.dimension_semantics<arbitrary>], iteration_bounds = array<i64: 2, 2>, scalar_prefetch = 0 : i64, scratch_operands = 0 : i64, tpu.core_type = #tpu.core_type<tc>, window_params = [{transform_indices = @transform_0, window_bounds = array<i64: 1, 8, 32>}, {pipeline_mode = #tpu.pipeline_mode<synchronous>, transform_indices = @transform_1, window_bounds = array<i64: 2, 32, 96>}, {pipeline_mode = #tpu.pipeline_mode<synchronous>, transform_indices = @transform_2, window_bounds = array<i64: 2, 32, 32>}, {pipeline_mode = #tpu.pipeline_mode<synchronous>, transform_indices = @transform_3, window_bounds = array<i64: 2, 32, 64>}, {pipeline_mode = #tpu.pipeline_mode<synchronous>, transform_indices = @transform_4, window_bounds = array<i64: 2, 64, 32>}, {pipeline_mode = #tpu.pipeline_mode<synchronous>, transform_indices = @transform_5, window_bounds = array<i64: 2, 8, 128>}, {transform_indices = @transform_6, window_bounds = array<i64: 1, 8, 32>}]} {
    %0 = arith.index_cast %arg1 : i32 to index
    %c0 = arith.constant 0 : index
    %c0_0 = arith.constant 0 : index
    %1 = vector.load %arg3[%0, %c0, %c0_0] : memref<2x32x96xf32, #tpu.memory_space<vmem>>, vector<1x32x96xf32>
    %2 = vector.shape_cast %1 : vector<1x32x96xf32> to vector<32x96xf32>
    %3 = arith.index_cast %arg1 : i32 to index
    %c0_1 = arith.constant 0 : index
    %c0_2 = arith.constant 0 : index
    %4 = vector.load %arg4[%3, %c0_1, %c0_2] : memref<2x32x32xf32, #tpu.memory_space<vmem>>, vector<1x32x32xf32>
    %5 = vector.shape_cast %4 : vector<1x32x32xf32> to vector<32x32xf32>
    %6 = arith.index_cast %arg1 : i32 to index
    %c0_3 = arith.constant 0 : index
    %c0_4 = arith.constant 0 : index
    %7 = vector.load %arg5[%6, %c0_3, %c0_4] : memref<2x32x64xf32, #tpu.memory_space<vmem>>, vector<1x32x64xf32>
    %8 = vector.shape_cast %7 : vector<1x32x64xf32> to vector<32x64xf32>
    %9 = arith.index_cast %arg1 : i32 to index
    %c0_5 = arith.constant 0 : index
    %c0_6 = arith.constant 0 : index
    %10 = vector.load %arg6[%9, %c0_5, %c0_6] : memref<2x64x32xf32, #tpu.memory_space<vmem>>, vector<1x64x32xf32>
    %11 = vector.shape_cast %10 : vector<1x64x32xf32> to vector<64x32xf32>
    %12 = arith.index_cast %arg1 : i32 to index
    %c0_7 = arith.constant 0 : index
    %c0_8 = arith.constant 0 : index
    %13 = vector.load %arg7[%12, %c0_7, %c0_8] : memref<2x8x128xf32, #tpu.memory_space<vmem>>, vector<1x8x128xf32>
    %14 = vector.shape_cast %13 : vector<1x8x128xf32> to vector<8x128xf32>
    %c0_i32 = arith.constant 0 : i32
    %15 = arith.cmpi eq, %arg1, %c0_i32 : i32
    %16 = arith.extui %15 : i1 to i32
    %c0_i32_9 = arith.constant 0 : i32
    %17 = arith.cmpi ne, %16, %c0_i32_9 : i32
    scf.if %17 {
      %c0_48 = arith.constant 0 : index
      %c0_49 = arith.constant 0 : index
      %c0_50 = arith.constant 0 : index
      %161 = vector.load %arg2[%c0_48, %c0_49, %c0_50] : memref<1x8x32xf32, #tpu.memory_space<vmem>>, vector<1x8x32xf32>
      %c0_51 = arith.constant 0 : index
      %c0_52 = arith.constant 0 : index
      %c0_53 = arith.constant 0 : index
      %162 = vector.load %arg8[%c0_51, %c0_52, %c0_53] : memref<1x8x32xf32, #tpu.memory_space<vmem>>, vector<1x8x32xf32>
      tpu.vector_store %arg8[%c0_51, %c0_52, %c0_53], %161 {strides = array<i32>} : memref<1x8x32xf32, #tpu.memory_space<vmem>>, vector<1x8x32xf32>,
    } else {
    }
    %c0_10 = arith.constant 0 : index
    %c0_11 = arith.constant 0 : index
    %c0_12 = arith.constant 0 : index
    %18 = vector.load %arg8[%c0_10, %c0_11, %c0_12] : memref<1x8x32xf32, #tpu.memory_space<vmem>>, vector<1x8x32xf32>
    %19 = vector.shape_cast %18 : vector<1x8x32xf32> to vector<8x32xf32>
    %cst = arith.constant dense<0.000000e+00> : vector<8x96xf32>
    %20 = tpu.matmul %19, %2, %cst {dimension_numbers = #tpu.dot_dimension_numbers<[1], [0], [0], [1], [0, 0, 1, 1], [], []>} : vector<8x32xf32>, vector<32x96xf32>, vector<8x96xf32> -> vector<8x96xf32>
    %21 = vector.extract_strided_slice %14 {offsets = [0, 0], sizes = [1, 96], strides = [1, 1]} : vector<8x128xf32> to vector<1x96xf32>
    %22 = vector.broadcast %21 : vector<1x96xf32> to vector<8x96xf32>
    %23 = arith.addf %20, %22 : vector<8x96xf32>
    %cst_13 = arith.constant 8.000000e+00 : f32
    %24 = math.sqrt %cst_13 : f32
    %cst_14 = arith.constant 1.000000e+00 : f32
    %25 = arith.divf %cst_14, %24 : f32
    %26 = vector.extract_strided_slice %23 {offsets = [0, 0], sizes = [8, 32], strides = [1, 1]} : vector<8x96xf32> to vector<8x32xf32>
    %27 = vector.broadcast %25 : f32 to vector<8x32xf32>
    %28 = arith.mulf %26, %27 : vector<8x32xf32>
    %29 = vector.shape_cast %28 : vector<8x32xf32> to vector<1x8x32xf32>
    %30 = vector.extract_strided_slice %23 {offsets = [0, 32], sizes = [8, 32], strides = [1, 1]} : vector<8x96xf32> to vector<8x32xf32>
    %31 = vector.shape_cast %30 : vector<8x32xf32> to vector<1x8x32xf32>
    %32 = vector.extract_strided_slice %23 {offsets = [0, 64], sizes = [8, 32], strides = [1, 1]} : vector<8x96xf32> to vector<8x32xf32>
    %33 = vector.shape_cast %32 : vector<8x32xf32> to vector<1x8x32xf32>
    %34 = vector.extract_strided_slice %29 {offsets = [0, 0, 0], sizes = [1, 8, 8], strides = [1, 1, 1]} : vector<1x8x32xf32> to vector<1x8x8xf32>
    %35 = vector.extract_strided_slice %31 {offsets = [0, 0, 0], sizes = [1, 8, 8], strides = [1, 1, 1]} : vector<1x8x32xf32> to vector<1x8x8xf32>
    "tpu.trace_start"() <{level = 10 : i32, message = "bqd,bkd->bqk"}> : () -> ()
    %cst_15 = arith.constant dense<0.000000e+00> : vector<1x8x8xf32>
    %36 = tpu.matmul %34, %35, %cst_15 {dimension_numbers = #tpu.dot_dimension_numbers<[2], [2], [1], [1], [0, 0, 0, 1, 1, 1], [0], [0]>} : vector<1x8x8xf32>, vector<1x8x8xf32>, vector<1x8x8xf32> -> vector<1x8x8xf32>
    "tpu.trace_stop"() : () -> ()
    %cst_16 = arith.constant dense<0xFF800000> : vector<1x8xf32>
    %37 = vector.multi_reduction <maximumf>, %36, %cst_16 [2] : vector<1x8x8xf32> to vector<1x8xf32>
    %38 = vector.shape_cast %37 : vector<1x8xf32> to vector<1x8x1xf32>
    %39 = vector.broadcast %38 : vector<1x8x1xf32> to vector<1x8x8xf32>
    %40 = arith.subf %36, %39 : vector<1x8x8xf32>
    %41 = math.exp %40 : vector<1x8x8xf32>
    %cst_17 = arith.constant dense<0.000000e+00> : vector<1x8xf32>
    %42 = vector.multi_reduction <add>, %41, %cst_17 [2] : vector<1x8x8xf32> to vector<1x8xf32>
    %43 = vector.shape_cast %42 : vector<1x8xf32> to vector<1x8x1xf32>
    %44 = vector.broadcast %43 : vector<1x8x1xf32> to vector<1x8x8xf32>
    %45 = arith.divf %41, %44 : vector<1x8x8xf32>
    %46 = vector.extract_strided_slice %33 {offsets = [0, 0, 0], sizes = [1, 8, 8], strides = [1, 1, 1]} : vector<1x8x32xf32> to vector<1x8x8xf32>
    "tpu.trace_start"() <{level = 10 : i32, message = "bqk,bkd->bqd"}> : () -> ()
    %cst_18 = arith.constant dense<0.000000e+00> : vector<1x8x8xf32>
    %47 = tpu.matmul %45, %46, %cst_18 {dimension_numbers = #tpu.dot_dimension_numbers<[2], [1], [1], [2], [0, 0, 0, 1, 1, 2], [0], [0]>} : vector<1x8x8xf32>, vector<1x8x8xf32>, vector<1x8x8xf32> -> vector<1x8x8xf32>
    "tpu.trace_stop"() : () -> ()
    %48 = vector.shape_cast %47 : vector<1x8x8xf32> to vector<8x8xf32>
    %49 = vector.extract_strided_slice %29 {offsets = [0, 0, 8], sizes = [1, 8, 8], strides = [1, 1, 1]} : vector<1x8x32xf32> to vector<1x8x8xf32>
    %50 = vector.extract_strided_slice %31 {offsets = [0, 0, 8], sizes = [1, 8, 8], strides = [1, 1, 1]} : vector<1x8x32xf32> to vector<1x8x8xf32>
    "tpu.trace_start"() <{level = 10 : i32, message = "bqd,bkd->bqk"}> : () -> ()
    %cst_19 = arith.constant dense<0.000000e+00> : vector<1x8x8xf32>
    %51 = tpu.matmul %49, %50, %cst_19 {dimension_numbers = #tpu.dot_dimension_numbers<[2], [2], [1], [1], [0, 0, 0, 1, 1, 1], [0], [0]>} : vector<1x8x8xf32>, vector<1x8x8xf32>, vector<1x8x8xf32> -> vector<1x8x8xf32>
    "tpu.trace_stop"() : () -> ()
    %cst_20 = arith.constant dense<0xFF800000> : vector<1x8xf32>
    %52 = vector.multi_reduction <maximumf>, %51, %cst_20 [2] : vector<1x8x8xf32> to vector<1x8xf32>
    %53 = vector.shape_cast %52 : vector<1x8xf32> to vector<1x8x1xf32>
    %54 = vector.broadcast %53 : vector<1x8x1xf32> to vector<1x8x8xf32>
    %55 = arith.subf %51, %54 : vector<1x8x8xf32>
    %56 = math.exp %55 : vector<1x8x8xf32>
    %cst_21 = arith.constant dense<0.000000e+00> : vector<1x8xf32>
    %57 = vector.multi_reduction <add>, %56, %cst_21 [2] : vector<1x8x8xf32> to vector<1x8xf32>
    %58 = vector.shape_cast %57 : vector<1x8xf32> to vector<1x8x1xf32>
    %59 = vector.broadcast %58 : vector<1x8x1xf32> to vector<1x8x8xf32>
    %60 = arith.divf %56, %59 : vector<1x8x8xf32>
    %61 = vector.extract_strided_slice %33 {offsets = [0, 0, 8], sizes = [1, 8, 8], strides = [1, 1, 1]} : vector<1x8x32xf32> to vector<1x8x8xf32>
    "tpu.trace_start"() <{level = 10 : i32, message = "bqk,bkd->bqd"}> : () -> ()
    %cst_22 = arith.constant dense<0.000000e+00> : vector<1x8x8xf32>
    %62 = tpu.matmul %60, %61, %cst_22 {dimension_numbers = #tpu.dot_dimension_numbers<[2], [1], [1], [2], [0, 0, 0, 1, 1, 2], [0], [0]>} : vector<1x8x8xf32>, vector<1x8x8xf32>, vector<1x8x8xf32> -> vector<1x8x8xf32>
    "tpu.trace_stop"() : () -> ()
    %63 = vector.shape_cast %62 : vector<1x8x8xf32> to vector<8x8xf32>
    %64 = vector.extract_strided_slice %29 {offsets = [0, 0, 16], sizes = [1, 8, 8], strides = [1, 1, 1]} : vector<1x8x32xf32> to vector<1x8x8xf32>
    %65 = vector.extract_strided_slice %31 {offsets = [0, 0, 16], sizes = [1, 8, 8], strides = [1, 1, 1]} : vector<1x8x32xf32> to vector<1x8x8xf32>
    "tpu.trace_start"() <{level = 10 : i32, message = "bqd,bkd->bqk"}> : () -> ()
    %cst_23 = arith.constant dense<0.000000e+00> : vector<1x8x8xf32>
    %66 = tpu.matmul %64, %65, %cst_23 {dimension_numbers = #tpu.dot_dimension_numbers<[2], [2], [1], [1], [0, 0, 0, 1, 1, 1], [0], [0]>} : vector<1x8x8xf32>, vector<1x8x8xf32>, vector<1x8x8xf32> -> vector<1x8x8xf32>
    "tpu.trace_stop"() : () -> ()
    %cst_24 = arith.constant dense<0xFF800000> : vector<1x8xf32>
    %67 = vector.multi_reduction <maximumf>, %66, %cst_24 [2] : vector<1x8x8xf32> to vector<1x8xf32>
    %68 = vector.shape_cast %67 : vector<1x8xf32> to vector<1x8x1xf32>
    %69 = vector.broadcast %68 : vector<1x8x1xf32> to vector<1x8x8xf32>
    %70 = arith.subf %66, %69 : vector<1x8x8xf32>
    %71 = math.exp %70 : vector<1x8x8xf32>
    %cst_25 = arith.constant dense<0.000000e+00> : vector<1x8xf32>
    %72 = vector.multi_reduction <add>, %71, %cst_25 [2] : vector<1x8x8xf32> to vector<1x8xf32>
    %73 = vector.shape_cast %72 : vector<1x8xf32> to vector<1x8x1xf32>
    %74 = vector.broadcast %73 : vector<1x8x1xf32> to vector<1x8x8xf32>
    %75 = arith.divf %71, %74 : vector<1x8x8xf32>
    %76 = vector.extract_strided_slice %33 {offsets = [0, 0, 16], sizes = [1, 8, 8], strides = [1, 1, 1]} : vector<1x8x32xf32> to vector<1x8x8xf32>
    "tpu.trace_start"() <{level = 10 : i32, message = "bqk,bkd->bqd"}> : () -> ()
    %cst_26 = arith.constant dense<0.000000e+00> : vector<1x8x8xf32>
    %77 = tpu.matmul %75, %76, %cst_26 {dimension_numbers = #tpu.dot_dimension_numbers<[2], [1], [1], [2], [0, 0, 0, 1, 1, 2], [0], [0]>} : vector<1x8x8xf32>, vector<1x8x8xf32>, vector<1x8x8xf32> -> vector<1x8x8xf32>
    "tpu.trace_stop"() : () -> ()
    %78 = vector.shape_cast %77 : vector<1x8x8xf32> to vector<8x8xf32>
    %79 = vector.extract_strided_slice %29 {offsets = [0, 0, 24], sizes = [1, 8, 8], strides = [1, 1, 1]} : vector<1x8x32xf32> to vector<1x8x8xf32>
    %80 = vector.extract_strided_slice %31 {offsets = [0, 0, 24], sizes = [1, 8, 8], strides = [1, 1, 1]} : vector<1x8x32xf32> to vector<1x8x8xf32>
    "tpu.trace_start"() <{level = 10 : i32, message = "bqd,bkd->bqk"}> : () -> ()
    %cst_27 = arith.constant dense<0.000000e+00> : vector<1x8x8xf32>
    %81 = tpu.matmul %79, %80, %cst_27 {dimension_numbers = #tpu.dot_dimension_numbers<[2], [2], [1], [1], [0, 0, 0, 1, 1, 1], [0], [0]>} : vector<1x8x8xf32>, vector<1x8x8xf32>, vector<1x8x8xf32> -> vector<1x8x8xf32>
    "tpu.trace_stop"() : () -> ()
    %cst_28 = arith.constant dense<0xFF800000> : vector<1x8xf32>
    %82 = vector.multi_reduction <maximumf>, %81, %cst_28 [2] : vector<1x8x8xf32> to vector<1x8xf32>
    %83 = vector.shape_cast %82 : vector<1x8xf32> to vector<1x8x1xf32>
    %84 = vector.broadcast %83 : vector<1x8x1xf32> to vector<1x8x8xf32>
    %85 = arith.subf %81, %84 : vector<1x8x8xf32>
    %86 = math.exp %85 : vector<1x8x8xf32>
    %cst_29 = arith.constant dense<0.000000e+00> : vector<1x8xf32>
    %87 = vector.multi_reduction <add>, %86, %cst_29 [2] : vector<1x8x8xf32> to vector<1x8xf32>
    %88 = vector.shape_cast %87 : vector<1x8xf32> to vector<1x8x1xf32>
    %89 = vector.broadcast %88 : vector<1x8x1xf32> to vector<1x8x8xf32>
    %90 = arith.divf %86, %89 : vector<1x8x8xf32>
    %91 = vector.extract_strided_slice %33 {offsets = [0, 0, 24], sizes = [1, 8, 8], strides = [1, 1, 1]} : vector<1x8x32xf32> to vector<1x8x8xf32>
    "tpu.trace_start"() <{level = 10 : i32, message = "bqk,bkd->bqd"}> : () -> ()
    %cst_30 = arith.constant dense<0.000000e+00> : vector<1x8x8xf32>
    %92 = tpu.matmul %90, %91, %cst_30 {dimension_numbers = #tpu.dot_dimension_numbers<[2], [1], [1], [2], [0, 0, 0, 1, 1, 2], [0], [0]>} : vector<1x8x8xf32>, vector<1x8x8xf32>, vector<1x8x8xf32> -> vector<1x8x8xf32>
    "tpu.trace_stop"() : () -> ()
    %93 = vector.shape_cast %92 : vector<1x8x8xf32> to vector<8x8xf32>
    %94 = tpu.concatenate %48, %63, %78, %93 in 1 : vector<8x8xf32>, vector<8x8xf32>, vector<8x8xf32>, vector<8x8xf32> -> vector<8x32xf32>
    %cst_31 = arith.constant dense<0.000000e+00> : vector<8x32xf32>
    %95 = tpu.matmul %94, %5, %cst_31 {dimension_numbers = #tpu.dot_dimension_numbers<[1], [0], [0], [1], [0, 0, 1, 1], [], []>} : vector<8x32xf32>, vector<32x32xf32>, vector<8x32xf32> -> vector<8x32xf32>
    %96 = vector.extract_strided_slice %14 {offsets = [1, 0], sizes = [1, 32], strides = [1, 1]} : vector<8x128xf32> to vector<1x32xf32>
    %97 = vector.broadcast %96 : vector<1x32xf32> to vector<8x32xf32>
    %98 = arith.addf %95, %97 : vector<8x32xf32>
    %99 = arith.addf %19, %98 : vector<8x32xf32>
    %100 = vector.extract_strided_slice %14 {offsets = [2, 0], sizes = [1, 32], strides = [1, 1]} : vector<8x128xf32> to vector<1x32xf32>
    %101 = vector.extract_strided_slice %14 {offsets = [3, 0], sizes = [1, 32], strides = [1, 1]} : vector<8x128xf32> to vector<1x32xf32>
    %cst_32 = arith.constant dense<0.000000e+00> : vector<8xf32>
    %102 = vector.multi_reduction <add>, %99, %cst_32 [1] : vector<8x32xf32> to vector<8xf32>
    %103 = vector.shape_cast %102 : vector<8xf32> to vector<8x1xf32>
    %cst_33 = arith.constant 3.200000e+01 : f32
    %104 = vector.broadcast %cst_33 : f32 to vector<8x1xf32>
    %105 = arith.divf %103, %104 : vector<8x1xf32>
    %106 = vector.broadcast %105 : vector<8x1xf32> to vector<8x32xf32>
    %107 = arith.subf %99, %106 : vector<8x32xf32>
    %108 = arith.mulf %107, %107 : vector<8x32xf32>
    %cst_34 = arith.constant dense<0.000000e+00> : vector<8xf32>
    %109 = vector.multi_reduction <add>, %108, %cst_34 [1] : vector<8x32xf32> to vector<8xf32>
    %110 = vector.shape_cast %109 : vector<8xf32> to vector<8x1xf32>
    %cst_35 = arith.constant 3.200000e+01 : f32
    %111 = vector.broadcast %cst_35 : f32 to vector<8x1xf32>
    %112 = arith.divf %110, %111 : vector<8x1xf32>
    %cst_36 = arith.constant 9.99999974E-6 : f32
    %113 = vector.broadcast %cst_36 : f32 to vector<8x1xf32>
    %114 = arith.addf %112, %113 : vector<8x1xf32>
    %115 = math.rsqrt %114 : vector<8x1xf32>
    %116 = vector.broadcast %105 : vector<8x1xf32> to vector<8x32xf32>
    %117 = arith.subf %99, %116 : vector<8x32xf32>
    %118 = vector.broadcast %115 : vector<8x1xf32> to vector<8x32xf32>
    %119 = arith.mulf %117, %118 : vector<8x32xf32>
    %120 = vector.broadcast %100 : vector<1x32xf32> to vector<8x32xf32>
    %121 = arith.mulf %119, %120 : vector<8x32xf32>
    %122 = vector.broadcast %101 : vector<1x32xf32> to vector<8x32xf32>
    %123 = arith.addf %121, %122 : vector<8x32xf32>
    %cst_37 = arith.constant dense<0.000000e+00> : vector<8x64xf32>
    %124 = tpu.matmul %123, %8, %cst_37 {dimension_numbers = #tpu.dot_dimension_numbers<[1], [0], [0], [1], [0, 0, 1, 1], [], []>} : vector<8x32xf32>, vector<32x64xf32>, vector<8x64xf32> -> vector<8x64xf32>
    %125 = vector.extract_strided_slice %14 {offsets = [4, 0], sizes = [1, 64], strides = [1, 1]} : vector<8x128xf32> to vector<1x64xf32>
    %126 = vector.broadcast %125 : vector<1x64xf32> to vector<8x64xf32>
    %127 = arith.addf %124, %126 : vector<8x64xf32>
    %cst_38 = arith.constant 0.000000e+00 : f32
    %128 = vector.broadcast %cst_38 : f32 to vector<8x64xf32>
    %129 = arith.maximumf %127, %128 : vector<8x64xf32>
    %cst_39 = arith.constant dense<0.000000e+00> : vector<8x32xf32>
    %130 = tpu.matmul %129, %11, %cst_39 {dimension_numbers = #tpu.dot_dimension_numbers<[1], [0], [0], [1], [0, 0, 1, 1], [], []>} : vector<8x64xf32>, vector<64x32xf32>, vector<8x32xf32> -> vector<8x32xf32>
    %131 = vector.extract_strided_slice %14 {offsets = [5, 0], sizes = [1, 32], strides = [1, 1]} : vector<8x128xf32> to vector<1x32xf32>
    %132 = vector.broadcast %131 : vector<1x32xf32> to vector<8x32xf32>
    %133 = arith.addf %130, %132 : vector<8x32xf32>
    %134 = arith.addf %123, %133 : vector<8x32xf32>
    %135 = vector.extract_strided_slice %14 {offsets = [6, 0], sizes = [1, 32], strides = [1, 1]} : vector<8x128xf32> to vector<1x32xf32>
    %136 = vector.extract_strided_slice %14 {offsets = [7, 0], sizes = [1, 32], strides = [1, 1]} : vector<8x128xf32> to vector<1x32xf32>
    %cst_40 = arith.constant dense<0.000000e+00> : vector<8xf32>
    %137 = vector.multi_reduction <add>, %134, %cst_40 [1] : vector<8x32xf32> to vector<8xf32>
    %138 = vector.shape_cast %137 : vector<8xf32> to vector<8x1xf32>
    %cst_41 = arith.constant 3.200000e+01 : f32
    %139 = vector.broadcast %cst_41 : f32 to vector<8x1xf32>
    %140 = arith.divf %138, %139 : vector<8x1xf32>
    %141 = vector.broadcast %140 : vector<8x1xf32> to vector<8x32xf32>
    %142 = arith.subf %134, %141 : vector<8x32xf32>
    %143 = arith.mulf %142, %142 : vector<8x32xf32>
    %cst_42 = arith.constant dense<0.000000e+00> : vector<8xf32>
    %144 = vector.multi_reduction <add>, %143, %cst_42 [1] : vector<8x32xf32> to vector<8xf32>
    %145 = vector.shape_cast %144 : vector<8xf32> to vector<8x1xf32>
    %cst_43 = arith.constant 3.200000e+01 : f32
    %146 = vector.broadcast %cst_43 : f32 to vector<8x1xf32>
    %147 = arith.divf %145, %146 : vector<8x1xf32>
    %cst_44 = arith.constant 9.99999974E-6 : f32
    %148 = vector.broadcast %cst_44 : f32 to vector<8x1xf32>
    %149 = arith.addf %147, %148 : vector<8x1xf32>
    %150 = math.rsqrt %149 : vector<8x1xf32>
    %151 = vector.broadcast %140 : vector<8x1xf32> to vector<8x32xf32>
    %152 = arith.subf %134, %151 : vector<8x32xf32>
    %153 = vector.broadcast %150 : vector<8x1xf32> to vector<8x32xf32>
    %154 = arith.mulf %152, %153 : vector<8x32xf32>
    %155 = vector.broadcast %135 : vector<1x32xf32> to vector<8x32xf32>
    %156 = arith.mulf %154, %155 : vector<8x32xf32>
    %157 = vector.broadcast %136 : vector<1x32xf32> to vector<8x32xf32>
    %158 = arith.addf %156, %157 : vector<8x32xf32>
    %159 = vector.shape_cast %158 : vector<8x32xf32> to vector<1x8x32xf32>
    %c0_45 = arith.constant 0 : index
    %c0_46 = arith.constant 0 : index
    %c0_47 = arith.constant 0 : index
    %160 = vector.load %arg8[%c0_45, %c0_46, %c0_47] : memref<1x8x32xf32, #tpu.memory_space<vmem>>, vector<1x8x32xf32>
    tpu.vector_store %arg8[%c0_45, %c0_46, %c0_47], %159 {strides = array<i32>} : memref<1x8x32xf32, #tpu.memory_space<vmem>>, vector<1x8x32xf32>,
    return
  }
  func.func @transform_0(%arg0: i32, %arg1: i32) -> (i32, i32, i32) {
    %c0_i32 = arith.constant 0 : i32
    %c0_i32_0 = arith.constant 0 : i32
    %c0_i32_1 = arith.constant 0 : i32
    return %arg0, %c0_i32, %c0_i32_0 : i32, i32, i32
  }
  func.func @transform_1(%arg0: i32, %arg1: i32) -> (i32, i32, i32) {
    %c0_i32 = arith.constant 0 : i32
    %c0_i32_0 = arith.constant 0 : i32
    %c0_i32_1 = arith.constant 0 : i32
    %c0_i32_2 = arith.constant 0 : i32
    return %c0_i32, %c0_i32_0, %c0_i32_1 : i32, i32, i32
  }
  func.func @transform_2(%arg0: i32, %arg1: i32) -> (i32, i32, i32) {
    %c0_i32 = arith.constant 0 : i32
    %c0_i32_0 = arith.constant 0 : i32
    %c0_i32_1 = arith.constant 0 : i32
    %c0_i32_2 = arith.constant 0 : i32
    return %c0_i32, %c0_i32_0, %c0_i32_1 : i32, i32, i32
  }
  func.func @transform_3(%arg0: i32, %arg1: i32) -> (i32, i32, i32) {
    %c0_i32 = arith.constant 0 : i32
    %c0_i32_0 = arith.constant 0 : i32
    %c0_i32_1 = arith.constant 0 : i32
    %c0_i32_2 = arith.constant 0 : i32
    return %c0_i32, %c0_i32_0, %c0_i32_1 : i32, i32, i32
  }
  func.func @transform_4(%arg0: i32, %arg1: i32) -> (i32, i32, i32) {
    %c0_i32 = arith.constant 0 : i32
    %c0_i32_0 = arith.constant 0 : i32
    %c0_i32_1 = arith.constant 0 : i32
    %c0_i32_2 = arith.constant 0 : i32
    return %c0_i32, %c0_i32_0, %c0_i32_1 : i32, i32, i32
  }
  func.func @transform_5(%arg0: i32, %arg1: i32) -> (i32, i32, i32) {
    %c0_i32 = arith.constant 0 : i32
    %c0_i32_0 = arith.constant 0 : i32
    %c0_i32_1 = arith.constant 0 : i32
    %c0_i32_2 = arith.constant 0 : i32
    return %c0_i32, %c0_i32_0, %c0_i32_1 : i32, i32, i32
  }
  func.func @transform_6(%arg0: i32, %arg1: i32) -> (i32, i32, i32) {
    %c0_i32 = arith.constant 0 : i32
    %c0_i32_0 = arith.constant 0 : i32
    %c0_i32_1 = arith.constant 0 : i32
    return %arg0, %c0_i32, %c0_i32_0 : i32, i32, i32
  }
}

</mosaic_0001>

<bundles_post_ra>
// kernel: tpu_custom_call.1
= control target key start
LH: loop header
LB: loop body
LE: loop exit
PB: predicated region body
PF: predicated region fallthrough
CT: control target
= control target key end

     0   :  { %s1595_s0 = inlined_call_operand.hbm [shape: f32[2,8,32], index: 0, kind: input, shape index: {}]   ;;  %s1596_s1 = inlined_call_operand.vmem [shape: f32[2,32,96], index: 1, kind: input, shape index: {}]   ;;  %s1597_s2 = inlined_call_operand.vmem [shape: f32[2,32,32], index: 2, kind: input, shape index: {}]   ;;  %s1598_s3 = inlined_call_operand.vmem [shape: f32[2,32,64], index: 3, kind: input, shape index: {}]   ;;  %s1599_s4 = inlined_call_operand.vmem [shape: f32[2,64,32], index: 4, kind: input, shape index: {}]   ;;  %s1600_s5 = inlined_call_operand.hbm [shape: f32[2,8,128], index: 5, kind: input, shape index: {}]   ;;  %s1601_s6 = inlined_call_operand.hbm [shape: f32[2,8,32], index: 6, kind: output, shape index: {}]  }
   0x1   :  { %1605 = sst [smem:[#allocation15_spill]] %s1600_s5 }
   0x2   :  { %11 = vsyncpa [#allocation3], 0 }
   0x3   :  { %13 = vsyncpa [#allocation3 + $0x1], 0 }
   0x4   :  { %14 = vsyncpa [#allocation6], 0 }
   0x5   :  { %15 = vsyncpa [#allocation4], 0 }
   0x6   :  { %17 = vsyncpa [#allocation4 + $0x1], 0  ;;  %s1324_s21 = smov 0   ;;  %s1326_s22 = smov 0  }
   0x7   :  { %s1328_s23 = smov 0   ;;  %s1330_s24 = smov 0  }
   0x8   :  { %s1332_s25 = smov 0   ;;  %s1334_s26 = smov 0  }
   0x9   :  { %s1336_s27 = smov 0   ;;  %s1338_s28 = smov 0  }
   0xa LB: > { %1606 = sst [smem:[#allocation11_spill]] %s1241_s21  ;;  %s944_s29 = sadd.s32 4294967295, %s1269_s28   ;;  %s1269_s28 = sphi %s1338_s28, %s23_s28   ;;  %s1265_s27 = sphi %s1336_s27, %s1625_s27   ;;  %s1261_s26 = sphi %s1334_s26, %s1620_s26   ;;  %s1257_s25 = sphi %s1332_s25, %s1624_s25   ;;  %s1253_s24 = sphi %s1330_s24, %s1619_s24   ;;  %s1249_s23 = sphi %s1328_s23, %s1623_s23   ;;  %s1245_s22 = sphi %s1326_s22, %s1622_s22   ;;  %s1241_s21 = sphi %s1324_s21, %s1621_s21  }
   0xb   : > { %1607 = sst [smem:[#allocation12_spill]] %s1261_s26  ;;  %p946_p0 = scmp.ge.s32.totalorder %s1269_s28, 1 }
   0xc   : > { %p1366_p1 = scmp.eq.s32.totalorder %s944_s29, 0  ;;  %p197_p2 = scmp.lt.s32.totalorder %s1269_s28, 5 }
   0xd   : > { %s1609_s5 = sld [smem:[#allocation15_spill]]  ;;  %s1271_s11 = smov [#allocation5]  }
   0xe   : > { %p1374_p3 = pnand %p946_p0, %p197_p2  ;;  %s222_s12 = sshll.u32 %s1271_s11, 4  ;;  %s223_s12 = int_to_ptr.vmem [resolvable:$true] %s222_s12 }
   0xf   : > { %s1272_s13 = smov 128   ;;  %s1273_s14 = smov 8  }
  0x10   : > { %p987_p4 = pneg %p1374_p3  ;;  %s945_s15 = sadd.s32 4294967294, %s1269_s28  }
  0x11   : > { %s32_s16 = sadd.s32 1, %s1261_s26  ;;  %s35_s17 = sadd.s32 1, %s1265_s27 }
  0x12   : > { %p988_p5 = pnand %p987_p4, %p1366_p1  ;;  %p33_p6 = scmp.ge.s32.totalorder %s32_s16, 2 }
  0x13   : > { %s220_s9 = sshll.u32 %s1609_s5, 4  ;;  %s42_s18 = sadd.s32 1, %s1249_s23  ;;  %s221_s9 = int_to_ptr.hbm [resolvable:$true] %s220_s9 }
  0x14   : > { %990 = dma.hbm_to_vmem [thread:$0]  (!%p988_p5), %s221_s9, 256, %s223_s12, [#allocation6], %s1272_s13, %s1272_s13, %s1273_s14  }
  0x15   : > { %p49_p7 = scmp.ne.s32.totalorder %s1249_s23, %s1245_s22  ;;  %p50_p8 = scmp.eq.s32.totalorder %s1269_s28, 0 }
  0x16   : > { %s1627_s16 = smov (%p33_p6, %s32_s16), 0  ;;  %s1629_s17 = smov (!%p33_p6, %s35_s17), %s1265_s27 }
  0x17   : > { %1611 = sst [smem:[#allocation13_spill]] %s1627_s16  ;;  %p1392_p9 = por %p50_p8, %p49_p7 }
  0x18   : > { %p55_p10 = scmp.ne.s32.totalorder %s1245_s22, %s1241_s21  ;;  %p37_p11 = scmp.ge.s32.totalorder %s1629_s17, 2 }
  0x19   : > { %p184_p12 = scmp.eq.s32.totalorder %s944_s29, 3  ;;  %p190_p0 = scmp.eq.s32.totalorder %s945_s15, 3 }
  0x1a   : > { %p1400_p13 = por %p1366_p1, %p55_p10  ;;  %s1631_s17 = smov (%p37_p11, %s1629_s17), 0 }
  0x1b   : > { %p1406_p2 = por %p184_p12, %p49_p7  ;;  %p1410_p4 = por %p190_p0, %p55_p10 }
  0x1c   : > { %s39_s9 = ssub.s32 %s1265_s27, %s1631_s17  ;;  %p1000_p5 = scmp.lt.s32.totalorder %s1269_s28, 4 }
  0x1d   : > { %s1615_s8 = scalar_select %p1410_p4, 1, 0 }
  0x1e   : > { %p40_p6 = scmp.eq.s32.totalorder %s39_s9, 0  ;;  %s236_s29 = sand.u32 1, %s1249_s23  }
  0x1f   : > { %1616 = sst [smem:[#allocation14_spill]] %s1615_s8  ;;  %s949_s11 = sshll.u32 %s236_s29, 3 }
  0x20   : > { %s1419_s12 = scalar_select %p40_p6, %s1249_s23, %s42_s18  }
  0x21   : > { %s950_s13 = sshll.u32 %s1265_s27, 3  ;;  %s240_s16 = scalar_lea.vmem [#allocation2], %s949_s11 }
  0x22   : > { %s244_s5 = scalar_lea.hbm %s1595_s0, %s950_s13  ;;  %s248_s26 = sshll.u32 %s240_s16, 4  ;;  %s249_s26 = int_to_ptr.vmem [resolvable:$true] %s248_s26 }
  0x23   : > { %s246_s21 = sshll.u32 %s244_s5, 4  ;;  %p992_p7 = pnand %p1000_p5, %p1392_p9  ;;  %s247_s21 = int_to_ptr.hbm [resolvable:$true] %s246_s21 }
  0x24   : > { %s237_s8 = scalar_lea.sflag [#allocation3], %s236_s29  ;;  %257 = sbr.rel (%p1374_p3) target bundleno = 2301 (0x8fd), region = 44 }
  0x25   : > { %994 = dma.hbm_to_vmem [thread:$0]  (!%p992_p7), %s247_s21, 128, %s249_s26, %s237_s8  }
  0x26   : > { %s1430_s18 = sand.u32 (!%p1374_p3), 1, %s1245_s22  }
  0x27   : > { %s952_s9 = sshll.u32 (!%p1374_p3), %s1430_s18, 3  ;;  %s260_s11 = scalar_lea.sflag (!%p1374_p3), [#allocation3], %s1430_s18 }
  0x28   : > { %s1436_s5 = scalar_lea.vmem (!%p1374_p3), [#allocation2], %s952_s9 }
  0x29   : > { %1228 = dma.done.wait (%p1400_p13), %s260_s11, 128  }
  0x2a   : > { %1230 = vsyncadd (%p1400_p13), %s260_s11, 4294967168 }
  0x2b   : > { %1232 = dma.done.wait (%p1366_p1), [#allocation6], 256  }
  0x2c   : > { %1234 = vsyncadd (%p1366_p1), [#allocation6], 4294967040  ;;  %s955_s21 = sshll.u32 %s1253_s24, 5  ;;  %s956_s20 = sshll.u32 %s1253_s24, 6 }
  0x2d   : > { %s299_s16 = scalar_lea.vmem %s1596_s1, %s955_s21  ;;  %s304_s29 = scalar_lea.vmem %s1597_s2, %s955_s21 }
  0x2e   : > { %s309_s15 = scalar_lea.vmem %s1598_s3, %s955_s21  ;;  %v300_v0 = vld [vmem:[%s299_s16] sm:$0xff]  ;;  %v301_v1 = vld [vmem:[%s299_s16 + $0x8] sm:$0xff]  ;;  %v302_v2 = vld [vmem:[%s299_s16 + $0x10] sm:$0xff]  ;;  %s957_s30 = sshll.u32 %s1253_s24, 3 }
  0x2f   : > { %v303_v3 = vld [vmem:[%s299_s16 + $0x18] sm:$0xff]  ;;  %v1458_v4 = vld [vmem:[%s304_s29] sm:$0xff]  ;;  %v1460_v5 = vld [vmem:[%s304_s29 + $0x8] sm:$0xff]  ;;  %s315_s10 = scalar_lea.vmem %s1599_s4, %s956_s20  ;;  %s325_s21 = scalar_lea.vmem [#allocation5], %s957_s30 }
  0x30   : > { %v1465_v6 = vld [vmem:[%s304_s29 + $0x10] sm:$0xff]  ;;  %v1467_v7 = vld [vmem:[%s304_s29 + $0x18] sm:$0xff]  ;;  %v1469_v8 = vld [vmem:[%s309_s15] sm:$0xff]  ;;  %s1481_s16 = scalar_lea.vmem [#allocation7], %s952_s9  ;;  %p958_p1 = scmp.ne.s32.totalorder %s1253_s24, 0 }
  0x31   : > { %v1471_v9 = vld [vmem:[%s309_s15 + $0x8] sm:$0xff]  ;;  %v1473_v10 = vld [vmem:[%s309_s15 + $0x10] sm:$0xff]  ;;  %v1475_v11 = vld [vmem:[%s309_s15 + $0x18] sm:$0xff] }
  0x32   : > { %v316_v12 = vld [vmem:[%s315_s10] sm:$0xff]  ;;  %v317_v13 = vld [vmem:[%s315_s10 + $0x8] sm:$0xff]  ;;  %v318_v14 = vld [vmem:[%s315_s10 + $0x10] sm:$0xff]  ;;  %330 = sbr.rel (%p958_p1) target bundleno = 57 (0x39), region = 56 }
  0x33   : > { %v319_v15 = vld [vmem:[%s315_s10 + $0x18] sm:$0xff]  ;;  %v320_v16 = vld [vmem:[%s315_s10 + $0x20] sm:$0xff]  ;;  %v321_v17 = vld [vmem:[%s315_s10 + $0x28] sm:$0xff] }
  0x34   : > { %v322_v18 = vld [vmem:[%s315_s10 + $0x30] sm:$0xff]  ;;  %v323_v19 = vld [vmem:[%s315_s10 + $0x38] sm:$0xff]  ;;  %v1477_v20 = vld [vmem:[%s325_s21] sm:$0xff] }
  0x37   : > { %v331_v21 = vld [vmem:[%s1436_s5] sm:$0xff]  ;;  %vm332_vm0 = vcmask 261120  }
  0x38   : > { %333 = vst.msk [vmem:[%s1481_s16] sm:$0xff] %vm332_vm0, %v331_v21 }
  0x39 PF: > { %352 = vmatpush.msra.mxu0 %v303_v3  ;;  %vm336_vm1 = vcmask 261120   ;;  %v335_v23 = vperm.slane %v1477_v20, 0  ;;  %s1274_s24 = smov 64   ;;  %s1275_s9 = smov 96   ;;  %vm364_vm2 = vcmask 64512  }
  0x3a   : > { %s1276_s5 = smov 120   ;;  %s1277_s19 = smov 56  }
  0x3b   : > { %353 = vmatpush.msra.mxu0 %v302_v2  ;;  %s1278_s8 = smov 88   ;;  %s1279_s29 = smov 104  }
  0x3c   : > { %s1280_s20 = smov 72   ;;  %s1281_s13 = smov 80  }
  0x3d   : > { %354 = vmatpush.msra.mxu0 %v301_v1  ;;  %s1282_s14 = smov 112   ;;  %s1283_s15 = smov 40  }
  0x3e   : > { %s1284_s30 = smov 8   ;;  %s1285_s11 = smov 48  }
  0x3f   : > { %v1487_v22 = vld [vmem:[%s1481_s16] sm:$0xff]  ;;  %355 = vmatpush.msra.mxu0 %v300_v0  ;;  %s1286_s26 = smov 16   ;;  %s1287_s10 = smov 24  }
  0x40   : > { %959 = vmatmul.msk.f32.vlgmr.msra.gmra.mxu0 %vm336_vm1, %v1487_v22  ;;  %s976_s21 = sshll.u32 %s1257_s25, 3  ;;  %s828_s25 = scalar_lea.sflag [#allocation4], %s1430_s18 }
  0x41   : > { %787 = vmatpush.msrb.mxu0 %v323_v19 }
  0x43   : > { %788 = vmatpush.msrb.mxu0 %v322_v18 }
  0x45   : > { %789 = vmatpush.msrb.mxu0 %v321_v17 }
  0x47   : > { %790 = vmatpush.msrb.mxu0 %v320_v16 }
  0x49   : > { %791 = vmatpush.msrb.mxu0 %v319_v15 }
  0x4b   : > { %792 = vmatpush.msrb.mxu0 %v318_v14 }
  0x4d   : > { %793 = vmatpush.msrb.mxu0 %v317_v13 }
  0x4f   : > { %794 = vmatpush.msrb.mxu0 %v316_v12 }
  0xbd   : > { %v357_v24 = vpop.f32.mrf.mxu0 }
  0xbe   : > { %v1492_v25 = vadd.f32 %v357_v24, %v335_v23 }
  0xc0   : > { %414 = vrot.lane.b32.xlu2 %v1492_v25, %s1274_s24  ;;  %362 = vrot.lane.b32.xlu0 %v1492_v25, %s1275_s9  ;;  %v360_v26 = vmul.f32 0.35355338, %v1492_v25 }
  0xc2   : > { %440 = vrot.lane.b32.xlu1 %v360_v26, %s1276_s5  ;;  %s838_s5 = scalar_lea.hbm %s1601_s6, %s976_s21 }
  0xc8   : > { %492 = vrot.lane.b32.xlu2 %v1492_v25, %s1277_s19  ;;  %442 = vrot.lane.b32.xlu0 %v1492_v25, %s1278_s8  ;;  %s840_s19 = sshll.u32 %s1481_s16, 4  ;;  %s842_s8 = sshll.u32 %s838_s5, 4  ;;  %s841_s19 = int_to_ptr.vmem [resolvable:$true] %s840_s19  ;;  %s843_s8 = int_to_ptr.hbm [resolvable:$true] %s842_s8 }
 0x11a   : > { %v415_v27 = vpop.permute.xlu2 %414 }
 0x11b   : > { %435 = vmatpush.msra.mxu2 %v415_v27 }
 0x122   : > { %v493_v28 = vpop.permute.xlu2 %492 }
 0x123   : > { %513 = vmatpush.msrb.mxu2 %v493_v28 }
 0x132   : > { %v363_v29 = vpop.permute.xlu0 %362 }
 0x133   : > { %960 = vmatpush.xpose.msk.msra.mxu1 %vm364_vm2, %v363_v29 }
 0x134   : > { %v441_v31 = vpop.permute.xlu1 %440 }
 0x136   : > { %961 = vmatmul.msk.f32.vlgmr.msra.gmra.mxu1 %vm364_vm2, %v360_v26 }
 0x13a   : > { %v443_v30 = vpop.permute.xlu0 %442 }
 0x13b   : > { %963 = vmatpush.xpose.msk.msra.mxu3 %vm364_vm2, %v443_v30 }
 0x13e   : > { %964 = vmatmul.msk.f32.vlgmr.msra.gmra.mxu3 %vm364_vm2, %v441_v31 }
 0x1b3   : > { %v387_v32 = vpop.f32.mrf.mxu1 }
 0x1b4   : > { %v390_v33 = vsel %vm364_vm2, %v387_v32, -inf }
 0x1b5   : > { %391 = vmax.xlane.f32.xlu1 %v390_v33 }
 0x1c1   : > { %v465_v34 = vpop.f32.mrf.mxu3 }
 0x1c2   : > { %v468_v35 = vsel %vm364_vm2, %v465_v34, -inf }
 0x1c3   : > { %469 = vmax.xlane.f32.xlu2 %v468_v35 }
 0x1ce   : > { %596 = vrot.lane.b32.xlu1 %v360_v26, %s1279_s29  ;;  %s1181_s29 = sshra.s32 %s843_s8, 4  ;;  %s1182_s29 = int_to_ptr.hbm [resolvable:$true] %s1181_s29 }
 0x1cf   : > { %p1188_p10 = scmp.lt.s32.totalorder %s1182_s29, %s1601_s6 }
 0x1db   : > { %598 = vrot.lane.b32.xlu2 %v1492_v25, %s1280_s20  ;;  %s1183_s20 = scalar_lea.hbm %s1182_s29, 8 }
 0x1dc   : > { %p1184_p3 = scmp.ne.s32.totalorder %s1182_s29, %s1183_s20 }
 0x1de   : > { %p1185_p8 = pnand %p1184_p3, %p1406_p2 }
 0x1e0   : > { %p1186_p9 = pneg %p1185_p8 }
 0x228   : > { %v392_v36 = vpop.xlane.xlu1 %391 }
 0x229   : > { %v393_v37 = vsub.f32 %v387_v32, %v392_v36 }
 0x22b   : > { %v394_v38 = vmul.f32 1.442695, %v393_v37 }
 0x22d   : > { %1085 = vpow2.f32 %v394_v38 }
 0x233   : > { %v1086_v39 = vpop.eup %1085 }
 0x234   : > { %v396_v40 = vsel %vm364_vm2, %v1086_v39, 0.0 }
 0x235   : > { %397 = vadd.xlane.f32.xlu2 %v396_v40 }
 0x236   : > { %v470_v41 = vpop.xlane.xlu2 %469 }
 0x237   : > { %v471_v42 = vsub.f32 %v465_v34, %v470_v41 }
 0x239   : > { %v472_v43 = vmul.f32 1.442695, %v471_v42 }
 0x23b   : > { %1087 = vpow2.f32 %v472_v43 }
 0x23e   : > { %v599_v46 = vpop.permute.xlu2 %598 }
 0x240   : > { %v597_v13 = vpop.permute.xlu1 %596 }
 0x241   : > { %v1088_v44 = vpop.eup %1087 }
 0x242   : > { %v474_v45 = vsel %vm364_vm2, %v1088_v44, 0.0 }
 0x243   : > { %475 = vadd.xlane.f32.xlu0 %v474_v45 }
 0x24d   : > { %520 = vrot.lane.b32.xlu2 %v1492_v25, %s1281_s13 }
 0x257   : > { %518 = vrot.lane.b32.xlu0 %v360_v26, %s1282_s14 }
 0x2a8   : > { %v398_v47 = vpop.xlane.xlu2 %397 }
 0x2a9   : > { %1089 = vrcp.f32 %v398_v47  ;;  %v410_v52 = vand.u32 2147483648, %v398_v47  ;;  %v408_v54 = vand.u32 2147483647, %v398_v47  ;;  %vm404_vm4 = vweird.f32 %v398_v47 }
 0x2ab   : > { %v411_v57 = vor.u32 1.1754944e-38, %v410_v52  ;;  %vm409_vm6 = vcmp.eq.f32.partialorder %v408_v54, 8.507059e+37 }
 0x2af   : > { %v1090_v48 = vpop.eup %1089 }
 0x2b0   : > { %v400_v49 = vmul.f32 %v1090_v48, %v398_v47  ;;  %v521_v50 = vpop.permute.xlu2 %520  ;;  %vm405_vm3 = vweird.f32 %v1090_v48 }
 0x2b1   : > { %966 = vmatpush.xpose.msk.msrb.mxu1 %vm364_vm2, %v521_v50  ;;  %vm406_vm5 = vmor %vm404_vm4, %vm405_vm3 }
 0x2b2   : > { %v401_v51 = vsub.f32 1.0, %v400_v49 }
 0x2b4   : > { %v402_v53 = vmul.f32 %v1090_v48, %v401_v51 }
 0x2b5   : > { %707 = vmatpush.msra.mxu1 %v1467_v7 }
 0x2b6   : > { %v476_v55 = vpop.xlane.xlu0 %475  ;;  %v403_v56 = vadd.f32 %v1090_v48, %v402_v53 }
 0x2b7   : > { %708 = vmatpush.msra.mxu1 %v1465_v6  ;;  %1091 = vrcp.f32 %v476_v55  ;;  %v488_v0 = vand.u32 2147483648, %v476_v55  ;;  %v486_v2 = vand.u32 2147483647, %v476_v55  ;;  %vm482_vm8 = vweird.f32 %v476_v55 }
 0x2b8   : > { %v407_v58 = vsel %vm406_vm5, %v1090_v48, %v403_v56  ;;  %vm687_vm5 = vcmask 130048  }
 0x2b9   : > { %709 = vmatpush.msra.mxu1 %v1460_v5  ;;  %v412_v59 = vsel %vm409_vm6, %v411_v57, %v407_v58  ;;  %v489_v5 = vor.u32 1.1754944e-38, %v488_v0  ;;  %vm487_vm10 = vcmp.eq.f32.partialorder %v486_v2, 8.507059e+37  ;;  %vm689_vm6 = vcmask 195584  }
 0x2ba   : > { %v413_v60 = vmul.f32 %v1086_v39, %v412_v59 }
 0x2bb   : > { %710 = vmatpush.msra.mxu1 %v1458_v4 }
 0x2bc   : > { %962 = vmatmul.msk.f32.vlgmr.msra.gmra.mxu2 %vm364_vm2, %v413_v60 }
 0x2bd   : > { %v1092_v61 = vpop.eup %1091  ;;  %969 = vmatpush.xpose.msk.msra.mxu2 %vm364_vm2, %v599_v46 }
 0x2be   : > { %v478_v62 = vmul.f32 %v1092_v61, %v476_v55  ;;  %vm483_vm7 = vweird.f32 %v1092_v61 }
 0x2bf   : > { %vm484_vm9 = vmor %vm482_vm8, %vm483_vm7 }
 0x2c0   : > { %v479_v63 = vsub.f32 1.0, %v478_v62 }
 0x2c2   : > { %v480_v1 = vmul.f32 %v1092_v61, %v479_v63 }
 0x2c4   : > { %v481_v3 = vadd.f32 %v1092_v61, %v480_v1 }
 0x2c6   : > { %v485_v6 = vsel %vm484_vm9, %v1092_v61, %v481_v3  ;;  %v1288_v3 = vmov 32.0  }
 0x2c7   : > { %v490_v4 = vsel %vm487_vm10, %v489_v5, %v485_v6  ;;  %vm775_vm10 = vcmask 523264  }
 0x2c8   : > { %v491_v7 = vmul.f32 %v1088_v44, %v490_v4 }
 0x2c9   : > { %v519_v12 = vpop.permute.xlu0 %518 }
 0x2ca   : > { %965 = vmatmul.msk.f32.vlgmr.msrb.gmra.mxu2 %vm364_vm2, %v491_v7  ;;  %967 = vmatmul.msk.f32.vlgmr.msrb.gmra.mxu1 %vm364_vm2, %v519_v12 }
 0x2d2   : > { %970 = vmatmul.msk.f32.vlgmr.msra.gmra.mxu2 %vm364_vm2, %v597_v13 }
 0x33f   : > { %v1519_v14 = vpop.f32.mrf.mxu2 }
 0x347   : > { %v543_v15 = vpop.f32.mrf.mxu1 }
 0x348   : > { %v546_v16 = vsel %vm364_vm2, %v543_v15, -inf }
 0x349   : > { %547 = vmax.xlane.f32.xlu2 %v546_v16 }
 0x34d   : > { %v515_v17 = vpop.f32.mrf.mxu2 }
 0x355   : > { %v621_v18 = vpop.f32.mrf.mxu2 }
 0x356   : > { %v624_v19 = vsel %vm364_vm2, %v621_v18, -inf }
 0x357   : > { %625 = vmax.xlane.f32.xlu1 %v624_v19 }
 0x370   : > { %648 = vrot.lane.b32.xlu1 %v1492_v25, %s1283_s15  ;;  %s1187_s15 = scalar_lea.hbm %s1601_s6, 16 }
 0x371   : > { %p1189_p11 = scmp.lt.s32.totalorder %s1187_s15, %s1183_s20 }
 0x373   : > { %p1190_p12 = por %p1189_p11, %p1188_p10 }
 0x375   : > { %p1191_p13 = pnand %p1190_p12, %p1186_p9 }
 0x3bc   : > { %v548_v21 = vpop.xlane.xlu2 %547 }
 0x3bd   : > { %v549_v23 = vsub.f32 %v543_v15, %v548_v21 }
 0x3bf   : > { %v550_v24 = vmul.f32 1.442695, %v549_v23 }
 0x3c1   : > { %1093 = vpow2.f32 %v550_v24 }
 0x3c7   : > { %v1094_v26 = vpop.eup %1093 }
 0x3c8   : > { %v552_v27 = vsel %vm364_vm2, %v1094_v26, 0.0 }
 0x3c9   : > { %553 = vadd.xlane.f32.xlu0 %v552_v27 }
 0x3ca   : > { %v626_v28 = vpop.xlane.xlu1 %625 }
 0x3cb   : > { %v627_v29 = vsub.f32 %v621_v18, %v626_v28 }
 0x3cd   : > { %v628_v30 = vmul.f32 1.442695, %v627_v29 }
 0x3cf   : > { %1095 = vpow2.f32 %v628_v30  ;;  %v745_v30 = vperm.slane %v1477_v20, 2 }
 0x3d5   : > { %v1096_v31 = vpop.eup %1095 }
 0x3d6   : > { %v630_v32 = vsel %vm364_vm2, %v1096_v31, 0.0 }
 0x3d7   : > { %631 = vadd.xlane.f32.xlu2 %v630_v32 }
 0x3dd   : > { %675 = vrot.lane.b32.xlu0 %v515_v17, %s1284_s30 }
 0x3e2   : > { %v649_v33 = vpop.permute.xlu1 %648 }
 0x3e3   : > { %669 = vmatpush.msrb.mxu2 %v649_v33  ;;  %v747_v33 = vperm.slane %v1477_v20, 3 }
 0x3ef   : > { %570 = vrot.lane.b32.xlu2 %v1492_v25, %s1285_s11 }
 0x43c   : > { %v554_v34 = vpop.xlane.xlu0 %553 }
 0x43d   : > { %1097 = vrcp.f32 %v554_v34  ;;  %v566_v39 = vand.u32 2147483648, %v554_v34  ;;  %vm560_vm12 = vweird.f32 %v554_v34  ;;  %v564_v41 = vand.u32 2147483647, %v554_v34 }
 0x43f   : > { %v567_v44 = vor.u32 1.1754944e-38, %v566_v39  ;;  %vm565_vm14 = vcmp.eq.f32.partialorder %v564_v41, 8.507059e+37 }
 0x443   : > { %v1098_v35 = vpop.eup %1097 }
 0x444   : > { %v556_v36 = vmul.f32 %v1098_v35, %v554_v34  ;;  %vm561_vm11 = vweird.f32 %v1098_v35 }
 0x445   : > { %vm562_vm13 = vmor %vm560_vm12, %vm561_vm11 }
 0x446   : > { %v557_v37 = vsub.f32 1.0, %v556_v36  ;;  %v749_v36 = vperm.slane %v1477_v20, 4 }
 0x448   : > { %v558_v38 = vmul.f32 %v1098_v35, %v557_v37 }
 0x44a   : > { %v559_v40 = vadd.f32 %v1098_v35, %v558_v38  ;;  %v632_v42 = vpop.xlane.xlu2 %631 }
 0x44b   : > { %1099 = vrcp.f32 %v632_v42  ;;  %v644_v50 = vand.u32 2147483648, %v632_v42  ;;  %v642_v52 = vand.u32 2147483647, %v632_v42  ;;  %vm638_vm0 = vweird.f32 %v632_v42 }
 0x44c   : > { %v563_v43 = vsel %vm562_vm13, %v1098_v35, %v559_v40  ;;  %1101 = vrcp.f32 %v1288_v3  ;;  %v774_v40 = vperm.slane %v1477_v20, 5 }
 0x44d   : > { %v568_v45 = vsel %vm565_vm14, %v567_v44, %v563_v43  ;;  %v645_v54 = vor.u32 1.1754944e-38, %v644_v50  ;;  %vm643_vm4 = vcmp.eq.f32.partialorder %v642_v52, 8.507059e+37 }
 0x44e   : > { %v569_v48 = vmul.f32 %v1094_v26, %v568_v45 }
 0x451   : > { %v1100_v46 = vpop.eup %1099 }
 0x452   : > { %v634_v25 = vmul.f32 %v1100_v46, %v632_v42  ;;  %v571_v47 = vpop.permute.xlu2 %570  ;;  %vm639_vm15 = vweird.f32 %v1100_v46  ;;  %v1102_v5 = vpop.eup %1101 }
 0x453   : > { %591 = vmatpush.msrb.mxu3 %v571_v47  ;;  %vm640_vm3 = vmor %vm638_vm0, %vm639_vm15  ;;  %v720_v6 = vmul.f32 32.0, %v1102_v5 }
 0x454   : > { %v635_v49 = vsub.f32 1.0, %v634_v25  ;;  %968 = vmatmul.msk.f32.vlgmr.msrb.gmra.mxu3 %vm364_vm2, %v569_v48 }
 0x455   : > { %765 = vmatpush.msra.mxu3 %v1475_v11  ;;  %v721_v4 = vsub.f32 1.0, %v720_v6 }
 0x456   : > { %v636_v51 = vmul.f32 %v1100_v46, %v635_v49 }
 0x457   : > { %766 = vmatpush.msra.mxu3 %v1473_v10  ;;  %v676_v10 = vpop.permute.xlu0 %675  ;;  %v722_v7 = vmul.f32 %v1102_v5, %v721_v4 }
 0x458   : > { %v637_v53 = vadd.f32 %v1100_v46, %v636_v51 }
 0x459   : > { %767 = vmatpush.msra.mxu3 %v1471_v9  ;;  %v686_v9 = vsel %vm364_vm2, %v1519_v14, %v676_v10  ;;  %v723_v12 = vadd.f32 %v1102_v5, %v722_v7 }
 0x45a   : > { %v641_v55 = vsel %vm640_vm3, %v1100_v46, %v637_v53 }
 0x45b   : > { %v646_v56 = vsel %vm643_vm4, %v645_v54, %v641_v55  ;;  %768 = vmatpush.msra.mxu3 %v1469_v8  ;;  %v691_v8 = vperm.slane %v1477_v20, 1 }
 0x45c   : > { %v647_v57 = vmul.f32 %v1096_v31, %v646_v56 }
 0x45e   : > { %971 = vmatmul.msk.f32.vlgmr.msrb.gmra.mxu2 %vm364_vm2, %v647_v57  ;;  %vm724_vm2 = vweird.f32 %v1102_v5 }
 0x45f   : > { %v725_v13 = vsel %vm724_vm2, %v1102_v5, %v723_v12 }
 0x4d7   : > { %v593_v11 = vpop.f32.mrf.mxu3 }
 0x4d8   : > { %679 = vrot.lane.b32.xlu2 %v593_v11, %s1286_s26  ;;  %v822_v11 = vperm.slane %v1477_v20, 6 }
 0x4e1   : > { %v671_v58 = vpop.f32.mrf.mxu2 }
 0x4e2   : > { %683 = vrot.lane.b32.xlu0 %v671_v58, %s1287_s10 }
 0x532   : > { %v680_v59 = vpop.permute.xlu2 %679 }
 0x533   : > { %v688_v60 = vsel %vm687_vm5, %v686_v9, %v680_v59  ;;  %v824_v59 = vperm.slane %v1477_v20, 7 }
 0x554   : > { %v684_v61 = vpop.permute.xlu0 %683 }
 0x555   : > { %v690_v62 = vsel %vm689_vm6, %v688_v60, %v684_v61 }
 0x556   : > { %972 = vmatmul.msk.f32.vlgmr.msra.gmra.mxu1 %vm336_vm1, %v690_v62 }
 0x5d3   : > { %v712_v63 = vpop.f32.mrf.mxu1 }
 0x5d4   : > { %v713_v0 = vadd.f32 %v712_v63, %v691_v8 }
 0x5d6   : > { %v715_v1 = vadd.f32 %v713_v0, %v1487_v22 }
 0x5d8   : > { %v716_v2 = vsel %vm336_vm1, %v715_v1, 0.0 }
 0x5d9   : > { %717 = vadd.xlane.f32.xlu1 %v716_v2 }
 0x64c   : > { %v718_v14 = vpop.xlane.xlu1 %717 }
 0x64d   : > { %v726_v15 = vmul.f32 %v725_v13, %v718_v14 }
 0x64f   : > { %v727_v16 = vsub.f32 %v715_v1, %v726_v15 }
 0x651   : > { %v728_v17 = vmul.f32 %v727_v16, %v727_v16 }
 0x653   : > { %v729_v18 = vsel %vm336_vm1, %v728_v17, 0.0 }
 0x654   : > { %730 = vadd.xlane.f32.xlu2 %v729_v18 }
 0x6c7   : > { %v731_v22 = vpop.xlane.xlu2 %730 }
 0x6c8   : > { %v732_v19 = vmul.f32 %v731_v22, %v725_v13 }
 0x6ca   : > { %v733_v21 = vadd.f32 1e-05, %v732_v19 }
 0x6cc   : > { %1103 = vrsqrt.f32 %v733_v21  ;;  %vm740_vm8 = vweird.f32 %v733_v21 }
 0x6d2   : > { %v1104_v23 = vpop.eup %1103 }
 0x6d3   : > { %v735_v24 = vmul.f32 %v1104_v23, %v733_v21  ;;  %vm741_vm7 = vweird.f32 %v1104_v23 }
 0x6d4   : > { %vm742_vm9 = vmor %vm740_vm8, %vm741_vm7 }
 0x6d5   : > { %v736_v26 = vmul.f32 %v1104_v23, %v735_v24 }
 0x6d7   : > { %v737_v27 = vmul.f32 0.5, %v736_v26 }
 0x6d9   : > { %v738_v28 = vsub.f32 1.5, %v737_v27 }
 0x6db   : > { %v739_v29 = vmul.f32 %v1104_v23, %v738_v28 }
 0x6dd   : > { %v743_v31 = vsel %vm742_vm9, %v1104_v23, %v739_v29 }
 0x6de   : > { %v744_v32 = vmul.f32 %v743_v31, %v727_v16 }
 0x6e0   : > { %v746_v34 = vmul.f32 %v745_v30, %v744_v32 }
 0x6e2   : > { %v748_v35 = vadd.f32 %v747_v33, %v746_v34 }
 0x6e4   : > { %973 = vmatmul.msk.f32.vlgmr.msra.gmra.mxu3 %vm336_vm1, %v748_v35 }
 0x767   : > { %v770_v37 = vpop.f32.mrf.mxu3 }
 0x768   : > { %v771_v38 = vadd.f32 %v770_v37, %v749_v36 }
 0x76a   : > { %v773_v39 = vmax.f32 %v771_v38, 0.0 }
 0x76c   : > { %974 = vmatmul.msk.f32.vlgmr.msrb.gmra.mxu0 %vm775_vm10, %v773_v39 }
 0x7e9   : > { %v796_v41 = vpop.f32.mrf.mxu0 }
 0x7ea   : > { %v797_v42 = vadd.f32 %v796_v41, %v774_v40 }
 0x7ec   : > { %v799_v43 = vadd.f32 %v797_v42, %v748_v35 }
 0x7ee   : > { %v800_v44 = vsel %vm336_vm1, %v799_v43, 0.0 }
 0x7ef   : > { %801 = vadd.xlane.f32.xlu0 %v800_v44 }
 0x862   : > { %v802_v45 = vpop.xlane.xlu0 %801 }
 0x863   : > { %v803_v46 = vmul.f32 %v802_v45, %v725_v13 }
 0x865   : > { %v804_v25 = vsub.f32 %v799_v43, %v803_v46 }
 0x867   : > { %v805_v47 = vmul.f32 %v804_v25, %v804_v25 }
 0x869   : > { %v806_v48 = vsel %vm336_vm1, %v805_v47, 0.0 }
 0x86a   : > { %807 = vadd.xlane.f32.xlu1 %v806_v48 }
 0x8dd   : > { %v808_v49 = vpop.xlane.xlu1 %807 }
 0x8de   : > { %v809_v50 = vmul.f32 %v808_v49, %v725_v13 }
 0x8e0   : > { %v810_v51 = vadd.f32 1e-05, %v809_v50 }
 0x8e2   : > { %1105 = vrsqrt.f32 %v810_v51  ;;  %vm817_vm12 = vweird.f32 %v810_v51 }
 0x8e8   : > { %v1106_v52 = vpop.eup %1105 }
 0x8e9   : > { %v812_v53 = vmul.f32 %v1106_v52, %v810_v51  ;;  %vm818_vm11 = vweird.f32 %v1106_v52 }
 0x8ea   : > { %vm819_vm13 = vmor %vm817_vm12, %vm818_vm11 }
 0x8eb   : > { %v813_v54 = vmul.f32 %v1106_v52, %v812_v53 }
 0x8ed   : > { %v814_v55 = vmul.f32 0.5, %v813_v54 }
 0x8ef   : > { %v815_v56 = vsub.f32 1.5, %v814_v55 }
 0x8f1   : > { %v816_v57 = vmul.f32 %v1106_v52, %v815_v56 }
 0x8f3   : > { %v820_v58 = vsel %vm819_vm13, %v1106_v52, %v816_v57 }
 0x8f4   : > { %v821_v10 = vmul.f32 %v820_v58, %v804_v25 }
 0x8f6   : > { %v823_v9 = vmul.f32 %v822_v11, %v821_v10 }
 0x8f8   : > { %v825_v60 = vadd.f32 %v824_v59, %v823_v9 }
 0x8fa   : > { %826 = vst.msk [vmem:[%s1481_s16] sm:$0xff] %vm336_vm1, %v825_v60 }
 0x8fb   : > { %1194 = shalt.err (!%p1191_p13)
}
 0x8fc   : > { %985 = dma.vmem_to_hbm [thread:$0]  (%p1406_p2), %s841_s19, 128, %s843_s8, %s828_s25  }
 0x8fd PF: > { %s1617_s18 = sld [smem:[#allocation11_spill]]  ;;  %p1002_p0 = scmp.ge.s32.totalorder %s1269_s28, 2 }
 0x8ff   : > { %p996_p5 = pnand %p1002_p0, %p1410_p4 }
 0x901   : > { %p997_p6 = pneg %p996_p5 }
 0x903   : > { %s854_s26 = sand.u32 1, %s1617_s18  }
 0x904   : > { %s855_s10 = scalar_lea.sflag [#allocation4], %s854_s26 }
 0x905   : > { %1236 = dma.done.wait (%p997_p6), %s855_s10, 128  }
 0x906   : > { %1238 = vsyncadd (%p997_p6), %s855_s10, 4294967168  ;;  %s23_s28 = sadd.s32 1, %s1269_s28   ;;  %s1619_s24 = sld [smem:[#allocation12_spill]] }
 0x907   : > { %p20_p7 = scmp.ge.s32.totalorder %s23_s28, 6   ;;  %s1620_s26 = sld [smem:[#allocation13_spill]] }
 0x908   : > { %s1621_s21 = smov %s1245_s22  ;;  %s1622_s22 = smov %s1249_s23 }
 0x909   : > { %s1623_s23 = smov %s1419_s12  ;;  %s1624_s25 = smov %s1265_s27 }
 0x90a   : > { %s1625_s27 = smov %s1631_s17  ;;  %22 = sbr.rel (!%p20_p7) target bundleno = 10 (0xa), region = 102 }
 0x90f   :  { %861 = vsyncpa [#allocation3], 1 }
 0x910   :  { %863 = vsyncpa [#allocation3 + $0x1], 1 }
 0x911   :  { %864 = vsyncpa [#allocation6], 1 }
 0x912   :  { %865 = vsyncpa [#allocation4], 1 }
 0x913   :  { %867 = vsyncpa [#allocation4 + $0x1], 1 }

</bundles_post_ra>
